<compile_context>
chip_gen: v6e
topology: v6e:2x2x1
jax: 0.10.0
libtpu: 0.0.40
codegen_flags: <defaults>
</compile_context>

<pallas_src>
import jax
import jax.numpy as jnp
from jax.experimental import pallas as pl
from jax.experimental.pallas import tpu as pltpu

EPS = 1e-5


def _cln_kernel(x_ref, g_ref, b_ref, o_ref):
    # x_ref: (1, C, tT) block in native NCT layout.
    # g_ref/b_ref: (1, C, 1) resident f32 parameter blocks.
    x = x_ref[...].astype(jnp.float32)
    mean = jnp.mean(x, axis=1, keepdims=True)           # reduce over channels (sublanes)
    xc = x - mean
    var = jnp.mean(xc * xc, axis=1, keepdims=True)      # biased variance (torch LayerNorm)
    inv = jax.lax.rsqrt(var + EPS)                      # EUP slot
    y = xc * inv * g_ref[...] + b_ref[...]
    o_ref[...] = y.astype(o_ref.dtype)


def _pick_tile_t(B, C, T):
    """VMEM-budget-driven lane tile.

    Prefers (in order): multiples of 128 that divide T exactly (unmasked
    stores), the largest tile that still yields >= 8 parallel grid steps
    (v7x has 2 TCs), and never dropping below 512 lanes (per-step overhead /
    DMA-contiguity floor).  Total block bytes stay ~<= 1 MiB per input buffer
    so double-buffered in+out plus f32 temporaries fit comfortably inside
    v5e's 16 MiB scoped-VMEM default (and v7x's 32 MiB default).
    """
    LANE = 128
    if T <= LANE:
        # Tiny sequences: full extent is the only legal dense choice; this
        # path is launch-overhead dominated and that is accepted.
        return T

    budget_elems = (1 << 20) // (4 * C)                  # ~1 MiB / buffer (f32)
    cap = max(LANE, (budget_elems // LANE) * LANE)
    cap = min(cap, 8192)                                 # contiguity saturates past this
    cap = min(cap, (T // LANE) * LANE)

    candidates = list(range(LANE, cap + 1, LANE))
    exact = [t for t in candidates if T % t == 0]        # no masked tail tile
    pool = exact if exact else candidates

    MIN_STEPS = 8                                        # keep both v7x TCs fed
    FLOOR = 512                                          # don't go below this for parallelism

    def steps(t):
        return B * pl.cdiv(T, t)

    # steps(t) is monotone non-increasing in t: take the largest tile that
    # still reaches MIN_STEPS; if none does, just take the largest tile.
    best = max((t for t in pool if steps(t) >= MIN_STEPS), default=pool[-1])
    # ... but never sacrifice lane-tile size below FLOOR just for step count.
    floor_t = max((t for t in pool if t <= FLOOR), default=pool[0])
    return max(best, floor_t)


def channelwise_layer_norm(x_nct, gamma, beta):
    """LayerNorm over the channel dim of an NCT tensor.  x: (B, C, T) -> (B, C, T)."""
    B, C, T = x_nct.shape
    tT = _pick_tile_t(B, C, T)
    grid = (B, pl.cdiv(T, tT))

    g = gamma.astype(jnp.float32).reshape(1, C, 1)
    b = beta.astype(jnp.float32).reshape(1, C, 1)

    return pl.pallas_call(
        _cln_kernel,
        grid=grid,
        in_specs=[
            pl.BlockSpec((1, C, tT), lambda i, j: (i, 0, j)),
            pl.BlockSpec((1, C, 1), lambda i, j: (0, 0, 0)),
            pl.BlockSpec((1, C, 1), lambda i, j: (0, 0, 0)),
        ],
        out_specs=pl.BlockSpec((1, C, tT), lambda i, j: (i, 0, j)),
        out_shape=jax.ShapeDtypeStruct((B, C, T), x_nct.dtype),
        # Tile budget already fits the smallest scoped-VMEM default (v5e 16 MiB),
        # so no vmem_limit_bytes override is required on any generation.
        compiler_params=pltpu.CompilerParams(
            dimension_semantics=("parallel", "parallel")),
    )(x_nct, g, b)


def _reference(x_nct, gamma, beta):
    # Pure-JAX reference matching torch nn.LayerNorm over the channel dim.
    x = jnp.transpose(x_nct, (0, 2, 1)).astype(jnp.float32)
    mean = jnp.mean(x, axis=-1, keepdims=True)
    var = jnp.mean((x - mean) ** 2, axis=-1, keepdims=True)
    y = (x - mean) / jnp.sqrt(var + EPS) * gamma + beta
    return jnp.transpose(y, (0, 2, 1)).astype(x_nct.dtype)


def _run_case(key, B, C, T):
    kx, kg, kb = jax.random.split(key, 3)
    x = jax.random.normal(kx, (B, C, T), dtype=jnp.float32)
    gamma = 1.0 + 0.1 * jax.random.normal(kg, (C,), dtype=jnp.float32)
    beta = 0.1 * jax.random.normal(kb, (C,), dtype=jnp.float32)

    out = channelwise_layer_norm(x, gamma, beta)
    out = jax.block_until_ready(out)

    ref = _reference(x, gamma, beta)
    assert out.shape == (B, C, T)
    assert jnp.allclose(out, ref, atol=1e-5, rtol=1e-5), (
        f"mismatch vs reference for shape {(B, C, T)}")


if __name__ == "__main__":
    key = jax.random.PRNGKey(0)
    k0, k1, k2, k3 = jax.random.split(key, 4)

    # Small shape consistent with the module's forward: x is (batch, channels, seq).
    _run_case(k0, B=2, C=4, T=16)
    # Lane-dense, exactly-dividing tile path (T multiple of 128).
    _run_case(k1, B=2, C=8, T=1024)
    # Ragged T (masked writeback on the tail tile only).
    _run_case(k2, B=2, C=8, T=600)
    # Larger channel count exercising the VMEM-budgeted big-tile path.
    _run_case(k3, B=4, C=80, T=3200)

    print("KERNEL_OK")
</pallas_src>

<mosaic_0001>
module attributes {stable_mosaic.version = 11 : i64} {
  func.func @_cln_kernel(%arg0: i32, %arg1: i32, %arg2: memref<1x4x16xf32, #tpu.memory_space<vmem>>, %arg3: memref<1x4x1xf32, #tpu.memory_space<vmem>>, %arg4: memref<1x4x1xf32, #tpu.memory_space<vmem>>, %arg5: memref<1x4x16xf32, #tpu.memory_space<vmem>>) attributes {dimension_semantics = [#tpu.dimension_semantics<parallel>, #tpu.dimension_semantics<parallel>], iteration_bounds = array<i64: 2, 1>, scalar_prefetch = 0 : i64, scratch_operands = 0 : i64, tpu.core_type = #tpu.core_type<tc>, window_params = [{transform_indices = @transform_0, window_bounds = array<i64: 1, 4, 16>}, {pipeline_mode = #tpu.pipeline_mode<synchronous>, transform_indices = @transform_1, window_bounds = array<i64: 1, 4, 1>}, {pipeline_mode = #tpu.pipeline_mode<synchronous>, transform_indices = @transform_2, window_bounds = array<i64: 1, 4, 1>}, {transform_indices = @transform_3, window_bounds = array<i64: 1, 4, 16>}]} {
    %c0 = arith.constant 0 : index
    %c0_0 = arith.constant 0 : index
    %c0_1 = arith.constant 0 : index
    %0 = vector.load %arg2[%c0, %c0_0, %c0_1] : memref<1x4x16xf32, #tpu.memory_space<vmem>>, vector<1x4x16xf32>
    %cst = arith.constant dense<0.000000e+00> : vector<1x16xf32>
    %1 = vector.multi_reduction <add>, %0, %cst [1] : vector<1x4x16xf32> to vector<1x16xf32>
    %2 = vector.shape_cast %1 : vector<1x16xf32> to vector<1x1x16xf32>
    %cst_2 = arith.constant 4.000000e+00 : f32
    %3 = vector.broadcast %cst_2 : f32 to vector<1x1x16xf32>
    %4 = arith.divf %2, %3 : vector<1x1x16xf32>
    %5 = vector.broadcast %4 : vector<1x1x16xf32> to vector<1x4x16xf32>
    %6 = arith.subf %0, %5 : vector<1x4x16xf32>
    %7 = arith.mulf %6, %6 : vector<1x4x16xf32>
    %cst_3 = arith.constant dense<0.000000e+00> : vector<1x16xf32>
    %8 = vector.multi_reduction <add>, %7, %cst_3 [1] : vector<1x4x16xf32> to vector<1x16xf32>
    %9 = vector.shape_cast %8 : vector<1x16xf32> to vector<1x1x16xf32>
    %cst_4 = arith.constant 4.000000e+00 : f32
    %10 = vector.broadcast %cst_4 : f32 to vector<1x1x16xf32>
    %11 = arith.divf %9, %10 : vector<1x1x16xf32>
    %cst_5 = arith.constant 9.99999974E-6 : f32
    %12 = vector.broadcast %cst_5 : f32 to vector<1x1x16xf32>
    %13 = arith.addf %11, %12 : vector<1x1x16xf32>
    %14 = math.rsqrt %13 : vector<1x1x16xf32>
    %15 = vector.broadcast %14 : vector<1x1x16xf32> to vector<1x4x16xf32>
    %16 = arith.mulf %6, %15 : vector<1x4x16xf32>
    %c0_6 = arith.constant 0 : index
    %c0_7 = arith.constant 0 : index
    %c0_8 = arith.constant 0 : index
    %17 = vector.load %arg3[%c0_6, %c0_7, %c0_8] : memref<1x4x1xf32, #tpu.memory_space<vmem>>, vector<1x4x1xf32>
    %18 = vector.broadcast %17 : vector<1x4x1xf32> to vector<1x4x16xf32>
    %19 = arith.mulf %16, %18 : vector<1x4x16xf32>
    %c0_9 = arith.constant 0 : index
    %c0_10 = arith.constant 0 : index
    %c0_11 = arith.constant 0 : index
    %20 = vector.load %arg4[%c0_9, %c0_10, %c0_11] : memref<1x4x1xf32, #tpu.memory_space<vmem>>, vector<1x4x1xf32>
    %21 = vector.broadcast %20 : vector<1x4x1xf32> to vector<1x4x16xf32>
    %22 = arith.addf %19, %21 : vector<1x4x16xf32>
    %c0_12 = arith.constant 0 : index
    %c0_13 = arith.constant 0 : index
    %c0_14 = arith.constant 0 : index
    %23 = vector.load %arg5[%c0_12, %c0_13, %c0_14] : memref<1x4x16xf32, #tpu.memory_space<vmem>>, vector<1x4x16xf32>
    tpu.vector_store %arg5[%c0_12, %c0_13, %c0_14], %22 {strides = array<i32>} : memref<1x4x16xf32, #tpu.memory_space<vmem>>, vector<1x4x16xf32>,
    return
  }
  func.func @transform_0(%arg0: i32, %arg1: i32) -> (i32, i32, i32) {
    %c0_i32 = arith.constant 0 : i32
    %c0_i32_0 = arith.constant 0 : i32
    return %arg0, %c0_i32, %arg1 : i32, i32, i32
  }
  func.func @transform_1(%arg0: i32, %arg1: i32) -> (i32, i32, i32) {
    %c0_i32 = arith.constant 0 : i32
    %c0_i32_0 = arith.constant 0 : i32
    %c0_i32_1 = arith.constant 0 : i32
    %c0_i32_2 = arith.constant 0 : i32
    return %c0_i32, %c0_i32_0, %c0_i32_1 : i32, i32, i32
  }
  func.func @transform_2(%arg0: i32, %arg1: i32) -> (i32, i32, i32) {
    %c0_i32 = arith.constant 0 : i32
    %c0_i32_0 = arith.constant 0 : i32
    %c0_i32_1 = arith.constant 0 : i32
    %c0_i32_2 = arith.constant 0 : i32
    return %c0_i32, %c0_i32_0, %c0_i32_1 : i32, i32, i32
  }
  func.func @transform_3(%arg0: i32, %arg1: i32) -> (i32, i32, i32) {
    %c0_i32 = arith.constant 0 : i32
    %c0_i32_0 = arith.constant 0 : i32
    return %arg0, %c0_i32, %arg1 : i32, i32, i32
  }
}

</mosaic_0001>

<bundles_post_ra>
// kernel: tpu_custom_call.1
= control target key start
LH: loop header
LB: loop body
LE: loop exit
PB: predicated region body
PF: predicated region fallthrough
CT: control target
= control target key end

     0   :  { %8 = vsyncpa [#allocation3], 0  ;;  %s594_s0 = inlined_call_operand.vmem [shape: f32[2,4,16], index: 0, kind: input, shape index: {}]   ;;  %s595_s1 = inlined_call_operand.vmem [shape: f32[1,4,1], index: 1, kind: input, shape index: {}]   ;;  %s596_s2 = inlined_call_operand.vmem [shape: f32[1,4,1], index: 2, kind: input, shape index: {}]   ;;  %s597_s3 = inlined_call_operand.hbm [shape: f32[2,4,16], index: 3, kind: output, shape index: {}]  }
   0x1   :  { %10 = vsyncpa [#allocation3 + $0x1], 0  ;;  %s486_s12 = smov 0   ;;  %s488_s13 = smov 0  }
   0x2   :  { %s490_s14 = smov 0   ;;  %s492_s15 = smov 0  }
   0x3   :  { %s494_s16 = smov 0   ;;  %s496_s17 = smov 0  }
   0x4 LB: > { %s316_s18 = sadd.s32 4294967295, %s462_s17   ;;  %s317_s19 = sadd.s32 4294967294, %s462_s17   ;;  %s462_s17 = sphi %s496_s17, %s16_s17   ;;  %s458_s16 = sphi %s494_s16, %s604_s16   ;;  %s454_s15 = sphi %s492_s15, %s603_s15   ;;  %s450_s14 = sphi %s490_s14, %s602_s14   ;;  %s446_s13 = sphi %s488_s13, %s601_s13   ;;  %s442_s12 = sphi %s486_s12, %s600_s12  }
   0x5   : > { %s28_s20 = sadd.s32 1, %s458_s16  ;;  %s107_s21 = sadd.s32 1, %s450_s14 }
   0x6   : > { %p30_p0 = scmp.ge.s32.totalorder %s28_s20, 2  ;;  %p117_p1 = scmp.ne.s32.totalorder %s450_s14, %s446_s13 }
   0x7   : > { %p118_p2 = scmp.eq.s32.totalorder %s316_s18, 1  ;;  %p123_p3 = scmp.ne.s32.totalorder %s446_s13, %s442_s12 }
   0x8   : > { %s606_s20 = smov (%p30_p0, %s28_s20), 0  ;;  %p124_p5 = scmp.eq.s32.totalorder %s317_s19, 1 }
   0x9   : > { %p526_p4 = por %p118_p2, %p117_p1  ;;  %s102_s23 = ssub.s32 %s458_s16, %s606_s20 }
   0xa   : > { %p320_p6 = scmp.ge.s32.totalorder %s462_s17, 1  ;;  %p105_p7 = scmp.eq.s32.totalorder %s102_s23, 0 }
   0xb   : > { %p533_p8 = por %p124_p5, %p123_p3  ;;  %p158_p9 = scmp.lt.s32.totalorder %s462_s17, 3 }
   0xc   : > { %s539_s25 = scalar_select %p105_p7, %s450_s14, %s107_s21  }
   0xd   : > { %p159_p10 = pnand %p320_p6, %p158_p9 }
   0xe   : > { %p184_p11 = scmp.lt.s32.totalorder (!%p159_p10), %s454_s15, 1  ;;  %s181_s8 = sand.u32 (!%p159_p10), 1, %s446_s13  }
   0xf   : > { %162 = sbr.rel (%p159_p10) target bundleno = 165 (0xa5), region = 32  ;;  %s321_s9 = sshll.u32 (!%p159_p10), %s181_s8, 2 }
  0x10   : > { %s324_s10 = sshll.u32 (!%p159_p10), %s454_s15, 6  ;;  %s183_s11 = scalar_lea.vmem (!%p159_p10), [#allocation2], %s321_s9 }
  0x11   : > { %s245_s18 = sshll.u32 (!%p159_p10), %s183_s11, 4  ;;  %s243_s23 = scalar_lea.hbm (!%p159_p10), %s597_s3, %s324_s10  ;;  %s246_s18 = int_to_ptr.vmem [resolvable:$true] %s245_s18 }
  0x12   : > { %s231_s26 = scalar_lea.sflag (!%p159_p10), [#allocation3], %s181_s8  ;;  %s386_s27 = scalar_lea.vmem (!%p159_p10), %s246_s18, 64 }
  0x13   : > { %p387_p12 = scmp.ne.s32.totalorder (!%p159_p10), %s246_s18, %s386_s27  ;;  %s465_s28 = smov (!%p159_p10), [#allocation2]  }
  0x14   : > { %v215_v0 = vld [vmem:[%s595_s1] sm:$0xf]  ;;  %v464_v1 = vmov 0   ;;  %s185_s30 = scalar_select %p184_p11, %s454_s15, 1  ;;  %vm192_vm0 = vcmask 125952  }
  0x15   : > { %383 = vset.pattern.permute.xlu0 %v464_v1  ;;  %v222_v2 = vld [vmem:[%s596_s2] sm:$0xf]  ;;  %p388_p13 = pnand %p387_p12, %p526_p4  ;;  %s390_s15 = sshll.u32 %s465_s28, 4  ;;  %s391_s15 = int_to_ptr.vmem [resolvable:$false] %s390_s15 }
  0x16   : > { %218 = vperm.xlu0 %383, %v215_v0   ;;  %s322_s4 = sshll.u32 %s185_s30, 2  ;;  %s392_s29 = scalar_lea.vmem %s391_s15, 128 }
  0x17   : > { %s190_s7 = scalar_lea.vmem %s594_s0, %s322_s4  ;;  %p389_p0 = pneg %p388_p13 }
  0x18   : > { %v191_v3 = vld [vmem:[%s190_s7] sm:$0xf]  ;;  %p393_p1 = scmp.lt.s32.totalorder %s246_s18, %s391_s15  ;;  %p394_p2 = scmp.lt.s32.totalorder %s392_s29, %s386_s27 }
  0x19   : > { %v193_v4 = vsel %vm192_vm0, %v191_v3, 0.0 }
  0x1a   : > { %225 = vperm.xlu0 %383, %v222_v2   ;;  %v194_v5 = vrot.slane %v193_v4, 4  ;;  %p395_p3 = por %p394_p2, %p393_p1 }
  0x1c   : > { %v195_v6 = vadd.f32 %v194_v5, %v193_v4  ;;  %p396_p5 = pnand %p395_p3, %p389_p0 }
  0x1e   : > { %v196_v7 = vrot.slane %v195_v6, 2 }
  0x20   : > { %v197_v8 = vadd.f32 %v196_v7, %v195_v6 }
  0x22   : > { %v198_v9 = vrot.slane %v197_v8, 1 }
  0x24   : > { %v199_v10 = vadd.f32 %v198_v9, %v197_v8 }
  0x26   : > { %v201_v11 = vmul.f32 0.25, %v199_v10 }
  0x28   : > { %v202_v12 = vsub.f32 %v191_v3, %v201_v11 }
  0x2a   : > { %v203_v13 = vmul.f32 %v202_v12, %v202_v12 }
  0x2c   : > { %v204_v14 = vsel %vm192_vm0, %v203_v13, 0.0 }
  0x2d   : > { %v205_v15 = vrot.slane %v204_v14, 4 }
  0x2f   : > { %v206_v16 = vadd.f32 %v205_v15, %v204_v14 }
  0x31   : > { %v207_v17 = vrot.slane %v206_v16, 2 }
  0x33   : > { %v208_v18 = vadd.f32 %v207_v17, %v206_v16 }
  0x35   : > { %v209_v19 = vrot.slane %v208_v18, 1 }
  0x37   : > { %v210_v20 = vadd.f32 %v209_v19, %v208_v18 }
  0x39   : > { %v211_v21 = vmul.f32 0.25, %v210_v20 }
  0x3b   : > { %v212_v22 = vadd.f32 1e-05, %v211_v21 }
  0x3d   : > { %384 = vrsqrt.f32 %v212_v22 }
  0x4a   : > { %v385_v23 = vpop.eup %384 }
  0x4b   : > { %v214_v24 = vmul.f32 %v385_v23, %v202_v12 }
  0x91   : > { %v219_v25 = vpop.permute.xlu0 %218 }
  0x92   : > { %v221_v26 = vmul.f32 %v219_v25, %v214_v24 }
  0x95   : > { %v226_v27 = vpop.permute.xlu0 %225 }
  0x96   : > { %v228_v28 = vadd.f32 %v226_v27, %v221_v26 }
  0x98   : > { %229 = vst.msk [vmem:[%s183_s11] sm:$0xf] %vm192_vm0, %v228_v28 }
  0x99   : > { %399 = shalt.err (!%p396_p5)
}
  0x9a   : > { %s400_s30 = scalar_lea.hbm %s243_s23, 64  ;;  %s404_s6 = scalar_lea.hbm %s597_s3, 128 }
  0x9b   : > { %p401_p6 = scmp.ne.s32.totalorder %s243_s23, %s400_s30  ;;  %p405_p10 = scmp.lt.s32.totalorder %s243_s23, %s597_s3 }
  0x9c   : > { %p406_p11 = scmp.lt.s32.totalorder %s404_s6, %s400_s30 }
  0x9d   : > { %p402_p7 = pnand %p401_p6, %p526_p4 }
  0x9e   : > { %p407_p12 = por %p406_p11, %p405_p10 }
  0x9f   : > { %p403_p9 = pneg %p402_p7 }
  0xa1   : > { %p408_p13 = pnand %p407_p12, %p403_p9 }
  0xa3   : > { %411 = shalt.err (!%p408_p13)
}
  0xa4   : > { %327 = dma.vmem_to_hbm [thread:$0]  (%p526_p4), %s246_s18, 64, %s243_s23, %s231_s26  }
  0xa5 PF: > { %p333_p0 = scmp.ge.s32.totalorder %s462_s17, 2  ;;  %s257_s9 = sand.u32 1, %s442_s12  }
  0xa6   : > { %s258_s10 = scalar_lea.sflag [#allocation3], %s257_s9 }
  0xa7   : > { %p330_p1 = pnand %p333_p0, %p533_p8 }
  0xa9   : > { %p331_p2 = pneg %p330_p1 }
  0xab   : > { %437 = dma.done.wait (%p331_p2), %s258_s10, 64  }
  0xac   : > { %439 = vsyncadd (%p331_p2), %s258_s10, 4294967232  ;;  %s16_s17 = sadd.s32 1, %s462_s17   ;;  %s600_s12 = smov %s446_s13 }
  0xad   : > { %p13_p3 = scmp.ge.s32.totalorder %s16_s17, 4   ;;  %s601_s13 = smov %s450_s14 }
  0xae   : > { %s602_s14 = smov %s539_s25  ;;  %s603_s15 = smov %s458_s16 }
  0xaf   : > { %s604_s16 = smov %s606_s20  ;;  %15 = sbr.rel (!%p13_p3) target bundleno = 4 (0x4), region = 67 }
  0xb4   :  { %263 = vsyncpa [#allocation3], 1 }
  0xb5   :  { %265 = vsyncpa [#allocation3 + $0x1], 1 }

</bundles_post_ra>
